<compile_context>
chip_gen: v5e
topology: v5e:2x2
jax: 0.10.0
libtpu: 0.0.40
codegen_flags: <defaults>
</compile_context>

<pallas_src>
import jax
import jax.numpy as jnp
from jax.experimental import pallas as pl
from jax.experimental.pallas import tpu as pltpu


def mlp1_kernel(x_ref, w_ref, b_ref, o_ref):
    # x_ref : (TILE_B, N)      w_ref : (2, N)      b_ref : (2, 1)
    # o_ref : (2, TILE_B)      -- lane-dense (batch on the lane axis)
    x = x_ref[...]
    w = w_ref[...]

    # logits^T = W @ x^T  -> (2, TILE_B).  Contract the N axes of both operands
    # (same NT pattern as q @ k^T in the flash-attention reference kernel).
    yT = jax.lax.dot_general(
        w, x, (((1,), (1,)), ((), ())), preferred_element_type=jnp.float32)
    yT = yT + b_ref[...]                          # bias broadcast along lanes

    # leaky_relu (PyTorch default negative_slope = 0.01)
    z = jnp.where(yT >= 0.0, yT, 0.01 * yT)

    # 2-class softmax via the sigmoid identity (no XLU max/sum reductions):
    #   p0 = exp(z0) / (exp(z0) + exp(z1)) = 1 / (1 + exp(z1 - z0))
    #   p1 = exp(z1 - z0) * p0
    z0 = z[0:1, :]                                # (1, TILE_B)
    z1 = z[1:2, :]
    e = jnp.exp(z1 - z0)
    p0 = pl.reciprocal(1.0 + e, approx=False)     # approx=True -> free EUP vrcp,
    p1 = e * p0                                   # but ~1e-4 accuracy

    o_ref[0:1, :] = p0
    o_ref[1:2, :] = p1


def _pick_tile_b(batch, n, itemsize):
    # ~4 MiB per x buffer (8 MiB double-buffered): far under the scoped VMEM
    # limits on all of v5e/v6e/v7x, yet each grid step moves enough bytes to
    # hide the ~0.35 us per-step overhead.
    budget = 8 * 1024 * 1024
    tile_b = budget // (2 * n * itemsize)
    tile_b = max(128, min(8192, (tile_b // 128) * 128))
    if batch <= tile_b:
        return batch                 # single block == full array (always legal)
    return tile_b                    # multiple of 128 -> legal block last-dim


def mlp1_forward(x, w, b, *, tile_b=None, input_dtype=None):
    """x: (B, N) f32, w: (2, N) f32 (PyTorch Linear layout), b: (2,) f32 -> (B, 2) f32."""
    B, N = x.shape
    assert w.shape == (2, N) and b.shape == (2,)

    if input_dtype is not None:
        # Optional bandwidth optimization (mainly v5e): bf16 inputs, f32 accumulate.
        x = x.astype(input_dtype)
        w = w.astype(input_dtype)
    b2 = b.astype(jnp.float32).reshape(2, 1)

    if tile_b is None:
        tile_b = _pick_tile_b(B, N, x.dtype.itemsize)
    else:
        tile_b = B if B <= tile_b else max(128, (tile_b // 128) * 128)

    grid = (pl.cdiv(B, tile_b),)

    out_t = pl.pallas_call(
        mlp1_kernel,
        out_shape=jax.ShapeDtypeStruct((2, B), jnp.float32),
        grid_spec=pltpu.PrefetchScalarGridSpec(
            num_scalar_prefetch=0,
            grid=grid,
            in_specs=[
                pl.BlockSpec((tile_b, N), lambda i: (i, 0)),   # x tile (pipelined)
                pl.BlockSpec((2, N), lambda i: (0, 0)),        # W  (VMEM-resident)
                pl.BlockSpec((2, 1), lambda i: (0, 0)),        # bias (VMEM-resident)
            ],
            out_specs=pl.BlockSpec((2, tile_b), lambda i: (0, i)),
        ),
        compiler_params=pltpu.CompilerParams(
            dimension_semantics=("parallel",),      # megacore sharding on v7x
            vmem_limit_bytes=32 * 1024 * 1024,
        ),
    )(x, w, b2)

    # (2, B) -> (B, 2): tiny layout-plumbing transpose outside the kernel.
    return out_t.T


if __name__ == "__main__":
    key = jax.random.PRNGKey(0)
    kx, kw, kb, kx2 = jax.random.split(key, 4)

    # Small shapes consistent with the module: batch=8, n_mlp=32.
    B, N_MLP = 8, 32
    x = jax.random.normal(kx, (B, N_MLP), dtype=jnp.float32)

    # Deterministic "Linear(n_mlp, 2)" parameters (PyTorch-style uniform range).
    bound = 1.0 / (N_MLP ** 0.5)
    w = jax.random.uniform(kw, (2, N_MLP), jnp.float32, -bound, bound)
    b = jax.random.uniform(kb, (2,), jnp.float32, -bound, bound)

    def ref_fn(xx):
        y = xx @ w.T + b
        y = jnp.where(y >= 0.0, y, 0.01 * y)
        return jax.nn.softmax(y, axis=1)

    out = mlp1_forward(x, w, b)
    jax.block_until_ready(out)
    assert out.shape == (B, 2)
    assert jnp.allclose(out, ref_fn(x), atol=1e-5, rtol=1e-4)

    # Larger batch with a forced small tile to exercise the pipelined grid path.
    B2 = 1024
    x2 = jax.random.normal(kx2, (B2, N_MLP), dtype=jnp.float32)
    out2 = mlp1_forward(x2, w, b, tile_b=256)     # grid = (4,), 256-row tiles
    jax.block_until_ready(out2)
    assert out2.shape == (B2, 2)
    assert jnp.allclose(out2, ref_fn(x2), atol=1e-5, rtol=1e-4)

    print("KERNEL_OK")
</pallas_src>

<mosaic_0001>
module attributes {stable_mosaic.version = 11 : i64} {
  func.func @mlp1_kernel(%arg0: i32, %arg1: memref<8x32xf32, #tpu.memory_space<vmem>>, %arg2: memref<2x32xf32, #tpu.memory_space<vmem>>, %arg3: memref<2x1xf32, #tpu.memory_space<vmem>>, %arg4: memref<2x8xf32, #tpu.memory_space<vmem>>) attributes {dimension_semantics = [#tpu.dimension_semantics<parallel>], iteration_bounds = array<i64: 1>, scalar_prefetch = 0 : i64, scratch_operands = 0 : i64, tpu.core_type = #tpu.core_type<tc>, window_params = [{transform_indices = @transform_0, window_bounds = array<i64: 8, 32>}, {pipeline_mode = #tpu.pipeline_mode<synchronous>, transform_indices = @transform_1, window_bounds = array<i64: 2, 32>}, {pipeline_mode = #tpu.pipeline_mode<synchronous>, transform_indices = @transform_2, window_bounds = array<i64: 2, 1>}, {transform_indices = @transform_3, window_bounds = array<i64: 2, 8>}]} {
    %c0 = arith.constant 0 : index
    %c0_0 = arith.constant 0 : index
    %0 = vector.load %arg1[%c0, %c0_0] : memref<8x32xf32, #tpu.memory_space<vmem>>, vector<8x32xf32>
    %c0_1 = arith.constant 0 : index
    %c0_2 = arith.constant 0 : index
    %1 = vector.load %arg2[%c0_1, %c0_2] : memref<2x32xf32, #tpu.memory_space<vmem>>, vector<2x32xf32>
    %cst = arith.constant dense<0.000000e+00> : vector<2x8xf32>
    %2 = tpu.matmul %1, %0, %cst {dimension_numbers = #tpu.dot_dimension_numbers<[1], [1], [0], [0], [0, 0, 1, 0], [], []>} : vector<2x32xf32>, vector<8x32xf32>, vector<2x8xf32> -> vector<2x8xf32>
    %c0_3 = arith.constant 0 : index
    %c0_4 = arith.constant 0 : index
    %3 = vector.load %arg3[%c0_3, %c0_4] : memref<2x1xf32, #tpu.memory_space<vmem>>, vector<2x1xf32>
    %4 = vector.broadcast %3 : vector<2x1xf32> to vector<2x8xf32>
    %5 = arith.addf %2, %4 : vector<2x8xf32>
    %cst_5 = arith.constant 0.000000e+00 : f32
    %6 = vector.broadcast %cst_5 : f32 to vector<2x8xf32>
    %7 = arith.cmpf oge, %5, %6 : vector<2x8xf32>
    %cst_6 = arith.constant 0.00999999977 : f32
    %8 = vector.broadcast %cst_6 : f32 to vector<2x8xf32>
    %9 = arith.mulf %8, %5 : vector<2x8xf32>
    %10 = arith.select %7, %5, %9 : vector<2x8xi1>, vector<2x8xf32>
    %11 = vector.extract_strided_slice %10 {offsets = [0, 0], sizes = [1, 8], strides = [1, 1]} : vector<2x8xf32> to vector<1x8xf32>
    %12 = vector.extract_strided_slice %10 {offsets = [1, 0], sizes = [1, 8], strides = [1, 1]} : vector<2x8xf32> to vector<1x8xf32>
    %13 = arith.subf %12, %11 : vector<1x8xf32>
    %14 = math.exp %13 : vector<1x8xf32>
    %cst_7 = arith.constant 1.000000e+00 : f32
    %15 = vector.broadcast %cst_7 : f32 to vector<1x8xf32>
    %16 = arith.addf %15, %14 : vector<1x8xf32>
    %17 = tpu.reciprocal %16 : vector<1x8xf32> -> vector<1x8xf32>
    %18 = arith.mulf %14, %17 : vector<1x8xf32>
    %c0_8 = arith.constant 0 : index
    %c0_9 = arith.constant 0 : index
    %19 = vector.load %arg4[%c0_8, %c0_9] : memref<2x8xf32, #tpu.memory_space<vmem>>, vector<1x8xf32>
    tpu.vector_store %arg4[%c0_8, %c0_9], %17 {strides = array<i32>} : memref<2x8xf32, #tpu.memory_space<vmem>>, vector<1x8xf32>,
    %c1 = arith.constant 1 : index
    %c0_10 = arith.constant 0 : index
    %20 = vector.load %arg4[%c1, %c0_10] : memref<2x8xf32, #tpu.memory_space<vmem>>, vector<1x8xf32>
    tpu.vector_store %arg4[%c1, %c0_10], %18 {strides = array<i32>} : memref<2x8xf32, #tpu.memory_space<vmem>>, vector<1x8xf32>,
    return
  }
  func.func @transform_0(%arg0: i32) -> (i32, i32) {
    %c0_i32 = arith.constant 0 : i32
    %c0_i32_0 = arith.constant 0 : i32
    return %arg0, %c0_i32 : i32, i32
  }
  func.func @transform_1(%arg0: i32) -> (i32, i32) {
    %c0_i32 = arith.constant 0 : i32
    %c0_i32_0 = arith.constant 0 : i32
    %c0_i32_1 = arith.constant 0 : i32
    return %c0_i32, %c0_i32_0 : i32, i32
  }
  func.func @transform_2(%arg0: i32) -> (i32, i32) {
    %c0_i32 = arith.constant 0 : i32
    %c0_i32_0 = arith.constant 0 : i32
    %c0_i32_1 = arith.constant 0 : i32
    return %c0_i32, %c0_i32_0 : i32, i32
  }
  func.func @transform_3(%arg0: i32) -> (i32, i32) {
    %c0_i32 = arith.constant 0 : i32
    %c0_i32_0 = arith.constant 0 : i32
    return %c0_i32, %arg0 : i32, i32
  }
}

</mosaic_0001>

<bundles_post_ra>
// kernel: tpu_custom_call.1
= control target key start
LH: loop header
LB: loop body
LE: loop exit
PB: predicated region body
PF: predicated region fallthrough
CT: control target
= control target key end

     0   :  { %8 = vsyncpa [#allocation3], 0  ;;  %s206_s0 = inlined_call_operand.hbm [shape: f32[8,32], index: 0, kind: input, shape index: {}]   ;;  %s207_s1 = inlined_call_operand.vmem [shape: f32[2,32], index: 1, kind: input, shape index: {}]   ;;  %s208_s2 = inlined_call_operand.vmem [shape: f32[2,1], index: 2, kind: input, shape index: {}]   ;;  %s209_s3 = inlined_call_operand.hbm [shape: f32[2,8], index: 3, kind: output, shape index: {}]  }
   0x1   :  { %9 = vsyncpa [#allocation4], 0  ;;  %s15_s14 = sshll.u32 %s206_s0, 4  ;;  %s171_s15 = smov [#allocation2]   ;;  %s16_s14 = int_to_ptr.hbm [resolvable:$true] %s15_s14 }
   0x2   :  { %s17_s16 = sshll.u32 %s171_s15, 4  ;;  %s18_s16 = int_to_ptr.vmem [resolvable:$true] %s17_s16 }
   0x3   :  { %20 = dma.hbm_to_vmem [thread:$0]  %s16_s14, 128, %s18_s16, [#allocation3]  }
   0x4   :  { %167 = dma.done.wait [#allocation3], 128  }
   0x5   :  { %168 = vsyncadd [#allocation3], 4294967168  ;;  %v172_v0 = vmov 0   ;;  %vm37_vm0 = vcmask 261120   ;;  %v29_v1 = vld [vmem:[#allocation2] sm:$0xff]  ;;  %vm89_vm5 = vcmask 58369  }
   0x6   :  { %114 = vset.pattern.permute.xlu0 %v172_v0  ;;  %v31_v2 = vld [vmem:[%s208_s2] sm:$0x3]  ;;  %109 = vmatpush.xpose.msk.msra.mxu0 %vm37_vm0, %v29_v1  ;;  %s173_s0 = smov [#allocation5]   ;;  %s99_s22 = sshll.u32 %s209_s3, 4  ;;  %s100_s22 = int_to_ptr.hbm [resolvable:$true] %s99_s22 }
   0x7   :  { %v30_v3 = vld [vmem:[%s207_s1] sm:$0x3]  ;;  %34 = vperm.xlu0 %114, %v31_v2   ;;  %s97_s1 = sshll.u32 %s173_s0, 4  ;;  %s98_s1 = int_to_ptr.vmem [resolvable:$true] %s97_s1 }
   0x9   :  { %110 = vmatmul.msk.f32.vlgmr.msra.gmra.mxu0 %vm37_vm0, %v30_v3 }
  0x79   :  { %v35_v4 = vpop.permute.xlu0 %34 }
  0x86   :  { %v61_v5 = vpop.f32.mrf.mxu0 }
  0x87   :  { %v62_v6 = vadd.f32 %v61_v5, %v35_v4 }
  0x89   :  { %vm64_vm1 = vcmp.ge.f32.partialorder %v62_v6, 0.0  ;;  %v65_v7 = vmul.f32 0.01, %v62_v6 }
  0x8b   :  { %v66_v8 = vsel %vm64_vm1, %v62_v6, %v65_v7 }
  0x8c   :  { %v68_v9 = vrot.slane %v66_v8, 7 }
  0x8e   :  { %v70_v10 = vsub.f32 %v66_v8, %v68_v9 }
  0x90   :  { %v71_v11 = vmul.f32 1.442695, %v70_v10 }
  0x92   :  { %115 = vpow2.f32 %v71_v11 }
  0x98   :  { %v116_v12 = vpop.eup %115 }
  0x99   :  { %v73_v13 = vadd.f32 1.0, %v116_v12 }
  0x9b   :  { %117 = vrcp.f32 %v73_v13  ;;  %v85_v17 = vand.u32 2147483648, %v73_v13  ;;  %v83_v19 = vand.u32 2147483647, %v73_v13  ;;  %vm79_vm3 = vweird.f32 %v73_v13 }
  0x9d   :  { %v86_v21 = vor.u32 1.1754944e-38, %v85_v17  ;;  %vm84_vm6 = vcmp.eq.f32.partialorder %v83_v19, 8.507059e+37 }
  0xa1   :  { %v118_v14 = vpop.eup %117 }
  0xa2   :  { %v75_v15 = vmul.f32 %v118_v14, %v73_v13  ;;  %vm80_vm2 = vweird.f32 %v118_v14 }
  0xa3   :  { %vm81_vm4 = vmor %vm79_vm3, %vm80_vm2 }
  0xa4   :  { %v76_v16 = vsub.f32 1.0, %v75_v15 }
  0xa6   :  { %v77_v18 = vmul.f32 %v118_v14, %v76_v16 }
  0xa8   :  { %v78_v20 = vadd.f32 %v118_v14, %v77_v18 }
  0xaa   :  { %v82_v22 = vsel %vm81_vm4, %v118_v14, %v78_v20 }
  0xab   :  { %v87_v23 = vsel %vm84_vm6, %v86_v21, %v82_v22 }
  0xac   :  { %v88_v24 = vmul.f32 %v116_v12, %v87_v23  ;;  %90 = vst.msk [vmem:[#allocation5 - $0x1] sm:$0x2] %vm89_vm5, %v87_v23 }
  0xae   :  { %91 = vst.msk [vmem:[#allocation5] sm:$0x2] %vm89_vm5, %v88_v24 }
  0xaf   :  { %102 = dma.vmem_to_hbm [thread:$0]  %s98_s1, 32, %s100_s22, [#allocation4]  }
  0xb0   :  { %169 = dma.done.wait [#allocation4], 32  }
  0xb1   :  { %170 = vsyncadd [#allocation4], 4294967264 }
  0xb2   :  { %107 = vsyncpa [#allocation3], 1 }
  0xb3   :  { %108 = vsyncpa [#allocation4], 1 }

</bundles_post_ra>
